<compile_context>
chip_gen: v5e
topology: v5e:2x2
jax: 0.10.0
libtpu: 0.0.40
codegen_flags: <defaults>
</compile_context>

<pallas_src>
import jax
import jax.numpy as jnp
from jax.experimental import pallas as pl
from jax.experimental.pallas import tpu as pltpu

LANES = 128      # TPU vreg lane width
SUBLANES = 8     # TPU vreg sublane count


def _round_up(x, m):
    return ((x + m - 1) // m) * m


def _policy_kernel(x_ref, p1_ref, p2_ref, p3_ref, out_ref):
    """One batch tile: 3 matmuls + 2 ReLUs + lane-padded softmax.

    p*_ref are packed [in+1, out] slabs: rows [:in] = W, row [in] = bias.
    Layer-3 padded lanes carry zero weights and a -1e30 bias, so they
    contribute exp()==0 to the softmax sum.  Only the real action lanes are
    written to the (narrow) output block.
    """
    x = x_ref[...]

    d1 = p1_ref.shape[0] - 1
    h1 = jnp.dot(x, p1_ref[:d1, :], preferred_element_type=jnp.float32)
    h1 = jnp.maximum(h1 + p1_ref[d1:, :], 0.0)

    d2 = p2_ref.shape[0] - 1
    h2 = jnp.dot(h1, p2_ref[:d2, :], preferred_element_type=jnp.float32)
    h2 = jnp.maximum(h2 + p2_ref[d2:, :], 0.0)

    d3 = p3_ref.shape[0] - 1
    logits = jnp.dot(h2, p3_ref[:d3, :], preferred_element_type=jnp.float32)
    logits = logits + p3_ref[d3:, :]          # padded lanes -> ~-1e30

    # numerically stable softmax over the (padded) lane dimension
    m = jnp.max(logits, axis=-1, keepdims=True)
    e = jnp.exp(logits - m)                   # padded lanes -> 0
    denom = jnp.sum(e, axis=-1, keepdims=True)
    # EUP approx reciprocal + one Newton step (~f32 exact, off the VPU path)
    r = pl.reciprocal(denom, approx=True)
    r = r * (2.0 - denom * r)

    num_action = out_ref.shape[-1]
    out_ref[...] = (e * r)[:, :num_action]    # padded lanes never reach HBM


def init_params(key, dim_state, num_action):
    """Mimics nn.Linear init U(-1/sqrt(fan_in), 1/sqrt(fan_in)).
    Weights stored as [in, out] (already transposed for x @ W)."""
    ks = jax.random.split(key, 6)

    def lin(kw, kb, fan_in, fan_out):
        bound = 1.0 / jnp.sqrt(jnp.float32(fan_in))
        w = jax.random.uniform(kw, (fan_in, fan_out), jnp.float32, -bound, bound)
        b = jax.random.uniform(kb, (fan_out,), jnp.float32, -bound, bound)
        return w, b

    w1, b1 = lin(ks[0], ks[1], dim_state, 64)
    w2, b2 = lin(ks[2], ks[3], 64, 32)
    w3, b3 = lin(ks[4], ks[5], 32, num_action)
    return {"w1": w1, "b1": b1, "w2": w2, "b2": b2, "w3": w3, "b3": b3}


def pack_params(params):
    """Pack each layer's (W, b) into one [in+1, out] slab; pad layer 3's
    output dim up to a multiple of 128 lanes (zero W, -1e30 bias) so the
    in-kernel softmax runs on a full-lane block."""
    def pack(w, b):
        return jnp.concatenate([w, b.reshape(1, -1)], axis=0)

    num_action = params["w3"].shape[1]
    n_pad = _round_up(num_action, LANES)
    pad = n_pad - num_action

    p1 = pack(params["w1"], params["b1"])
    p2 = pack(params["w2"], params["b2"])

    w3p = jnp.pad(params["w3"], ((0, 0), (0, pad)))
    b3p = jnp.pad(params["b3"].reshape(1, -1), ((0, 0), (0, pad)),
                  constant_values=-1e30)
    p3 = jnp.concatenate([w3p, b3p], axis=0)
    return {"p1": p1, "p2": p2, "p3": p3, "num_action": num_action}


def policy_net_forward(state, packed, *, block_batch=4096):
    """state: [B, dim_state] float32; packed: output of pack_params."""
    p1, p2, p3 = packed["p1"], packed["p2"], packed["p3"]
    num_action = packed["num_action"]
    B, dim_state = state.shape

    # Batch tile: multiple of 8 sublanes, capped by block_batch.
    b_pad = _round_up(B, SUBLANES)
    tb = min(_round_up(block_batch, SUBLANES), b_pad)
    # Give the grid at least 2 steps when the batch allows it, so the
    # "parallel" batch axis can feed both TensorCores on v7x.
    if b_pad // tb < 2 and b_pad >= 2 * SUBLANES:
        tb = _round_up((b_pad + 1) // 2, SUBLANES)
    b_pad = _round_up(b_pad, tb)

    if b_pad != B:
        state = jnp.pad(state, ((0, b_pad - B), (0, 0)))

    out = pl.pallas_call(
        _policy_kernel,
        out_shape=jax.ShapeDtypeStruct((b_pad, num_action), jnp.float32),
        grid=(b_pad // tb,),
        in_specs=[
            # batch-tiled states
            pl.BlockSpec((tb, dim_state), lambda i: (i, 0)),
            # parameter slabs: constant block index -> resident in VMEM
            pl.BlockSpec(p1.shape, lambda i: (0, 0)),
            pl.BlockSpec(p2.shape, lambda i: (0, 0)),
            pl.BlockSpec(p3.shape, lambda i: (0, 0)),
        ],
        # narrow output: last block dim == full array dim, so (8,128) rule ok
        out_specs=pl.BlockSpec((tb, num_action), lambda i: (i, 0)),
        compiler_params=pltpu.CompilerParams(
            dimension_semantics=("parallel",),
            vmem_limit_bytes=32 << 20),
    )(state, p1, p2, p3)

    if b_pad != B:
        out = out[:B]
    return out


if __name__ == "__main__":
    key = jax.random.PRNGKey(0)
    k_param, k_state = jax.random.split(key)

    dim_state = 16
    num_action = 8
    batch = 200  # deliberately not a multiple of the batch tile

    raw = init_params(k_param, dim_state, num_action)
    packed = pack_params(raw)
    state = jax.random.normal(k_state, (batch, dim_state), jnp.float32)

    # batch < block_batch, so the >=2-step-grid logic kicks in (grid=(2,))
    prob = policy_net_forward(state, packed)
    prob = jax.block_until_ready(prob)

    # reference in plain JAX
    h1 = jax.nn.relu(state @ raw["w1"] + raw["b1"])
    h2 = jax.nn.relu(h1 @ raw["w2"] + raw["b2"])
    ref = jax.nn.softmax(h2 @ raw["w3"] + raw["b3"], axis=-1)

    assert prob.shape == (batch, num_action)
    assert jnp.allclose(jnp.sum(prob, axis=-1), 1.0, atol=1e-5)
    assert jnp.allclose(prob, ref, atol=1e-5)

    print("KERNEL_OK")
</pallas_src>

<mosaic_0001>
module attributes {stable_mosaic.version = 11 : i64} {
  func.func @_policy_kernel(%arg0: i32, %arg1: memref<104x16xf32, #tpu.memory_space<vmem>>, %arg2: memref<17x64xf32, #tpu.memory_space<vmem>>, %arg3: memref<65x32xf32, #tpu.memory_space<vmem>>, %arg4: memref<33x128xf32, #tpu.memory_space<vmem>>, %arg5: memref<104x8xf32, #tpu.memory_space<vmem>>) attributes {dimension_semantics = [#tpu.dimension_semantics<parallel>], iteration_bounds = array<i64: 2>, scalar_prefetch = 0 : i64, scratch_operands = 0 : i64, tpu.core_type = #tpu.core_type<tc>, window_params = [{transform_indices = @transform_0, window_bounds = array<i64: 104, 16>}, {pipeline_mode = #tpu.pipeline_mode<synchronous>, transform_indices = @transform_1, window_bounds = array<i64: 17, 64>}, {pipeline_mode = #tpu.pipeline_mode<synchronous>, transform_indices = @transform_2, window_bounds = array<i64: 65, 32>}, {pipeline_mode = #tpu.pipeline_mode<synchronous>, transform_indices = @transform_3, window_bounds = array<i64: 33, 128>}, {transform_indices = @transform_4, window_bounds = array<i64: 104, 8>}]} {
    %c0 = arith.constant 0 : index
    %c0_0 = arith.constant 0 : index
    %0 = vector.load %arg1[%c0, %c0_0] : memref<104x16xf32, #tpu.memory_space<vmem>>, vector<104x16xf32>
    %c0_1 = arith.constant 0 : index
    %c0_2 = arith.constant 0 : index
    %1 = vector.load %arg2[%c0_1, %c0_2] : memref<17x64xf32, #tpu.memory_space<vmem>>, vector<16x64xf32>
    %cst = arith.constant dense<0.000000e+00> : vector<104x64xf32>
    %2 = tpu.matmul %0, %1, %cst {dimension_numbers = #tpu.dot_dimension_numbers<[1], [0], [0], [1], [0, 0, 1, 1], [], []>} : vector<104x16xf32>, vector<16x64xf32>, vector<104x64xf32> -> vector<104x64xf32>
    %c16 = arith.constant 16 : index
    %c0_3 = arith.constant 0 : index
    %3 = vector.load %arg2[%c16, %c0_3] : memref<17x64xf32, #tpu.memory_space<vmem>>, vector<1x64xf32>
    %4 = vector.broadcast %3 : vector<1x64xf32> to vector<104x64xf32>
    %5 = arith.addf %2, %4 : vector<104x64xf32>
    %cst_4 = arith.constant 0.000000e+00 : f32
    %6 = vector.broadcast %cst_4 : f32 to vector<104x64xf32>
    %7 = arith.maximumf %5, %6 : vector<104x64xf32>
    %c0_5 = arith.constant 0 : index
    %c0_6 = arith.constant 0 : index
    %8 = vector.load %arg3[%c0_5, %c0_6] : memref<65x32xf32, #tpu.memory_space<vmem>>, vector<64x32xf32>
    %cst_7 = arith.constant dense<0.000000e+00> : vector<104x32xf32>
    %9 = tpu.matmul %7, %8, %cst_7 {dimension_numbers = #tpu.dot_dimension_numbers<[1], [0], [0], [1], [0, 0, 1, 1], [], []>} : vector<104x64xf32>, vector<64x32xf32>, vector<104x32xf32> -> vector<104x32xf32>
    %c64 = arith.constant 64 : index
    %c0_8 = arith.constant 0 : index
    %10 = vector.load %arg3[%c64, %c0_8] : memref<65x32xf32, #tpu.memory_space<vmem>>, vector<1x32xf32>
    %11 = vector.broadcast %10 : vector<1x32xf32> to vector<104x32xf32>
    %12 = arith.addf %9, %11 : vector<104x32xf32>
    %cst_9 = arith.constant 0.000000e+00 : f32
    %13 = vector.broadcast %cst_9 : f32 to vector<104x32xf32>
    %14 = arith.maximumf %12, %13 : vector<104x32xf32>
    %c0_10 = arith.constant 0 : index
    %c0_11 = arith.constant 0 : index
    %15 = vector.load %arg4[%c0_10, %c0_11] : memref<33x128xf32, #tpu.memory_space<vmem>>, vector<32x128xf32>
    %cst_12 = arith.constant dense<0.000000e+00> : vector<104x128xf32>
    %16 = tpu.matmul %14, %15, %cst_12 {dimension_numbers = #tpu.dot_dimension_numbers<[1], [0], [0], [1], [0, 0, 1, 1], [], []>} : vector<104x32xf32>, vector<32x128xf32>, vector<104x128xf32> -> vector<104x128xf32>
    %c32 = arith.constant 32 : index
    %c0_13 = arith.constant 0 : index
    %17 = vector.load %arg4[%c32, %c0_13] : memref<33x128xf32, #tpu.memory_space<vmem>>, vector<1x128xf32>
    %18 = vector.broadcast %17 : vector<1x128xf32> to vector<104x128xf32>
    %19 = arith.addf %16, %18 : vector<104x128xf32>
    %cst_14 = arith.constant dense<0xFF800000> : vector<104xf32>
    %20 = vector.multi_reduction <maximumf>, %19, %cst_14 [1] : vector<104x128xf32> to vector<104xf32>
    %21 = vector.shape_cast %20 : vector<104xf32> to vector<104x1xf32>
    %22 = vector.broadcast %21 : vector<104x1xf32> to vector<104x128xf32>
    %23 = arith.subf %19, %22 : vector<104x128xf32>
    %24 = math.exp %23 : vector<104x128xf32>
    %cst_15 = arith.constant dense<0.000000e+00> : vector<104xf32>
    %25 = vector.multi_reduction <add>, %24, %cst_15 [1] : vector<104x128xf32> to vector<104xf32>
    %26 = vector.shape_cast %25 : vector<104xf32> to vector<104x1xf32>
    %27 = tpu.reciprocal %26 {approx = true} : vector<104x1xf32> -> vector<104x1xf32>
    %28 = arith.mulf %26, %27 : vector<104x1xf32>
    %cst_16 = arith.constant 2.000000e+00 : f32
    %29 = vector.broadcast %cst_16 : f32 to vector<104x1xf32>
    %30 = arith.subf %29, %28 : vector<104x1xf32>
    %31 = arith.mulf %27, %30 : vector<104x1xf32>
    %32 = vector.broadcast %31 : vector<104x1xf32> to vector<104x128xf32>
    %33 = arith.mulf %24, %32 : vector<104x128xf32>
    %34 = vector.extract_strided_slice %33 {offsets = [0, 0], sizes = [104, 8], strides = [1, 1]} : vector<104x128xf32> to vector<104x8xf32>
    %c0_17 = arith.constant 0 : index
    %c0_18 = arith.constant 0 : index
    %35 = vector.load %arg5[%c0_17, %c0_18] : memref<104x8xf32, #tpu.memory_space<vmem>>, vector<104x8xf32>
    tpu.vector_store %arg5[%c0_17, %c0_18], %34 {strides = array<i32>} : memref<104x8xf32, #tpu.memory_space<vmem>>, vector<104x8xf32>,
    return
  }
  func.func @transform_0(%arg0: i32) -> (i32, i32) {
    %c0_i32 = arith.constant 0 : i32
    %c0_i32_0 = arith.constant 0 : i32
    return %arg0, %c0_i32 : i32, i32
  }
  func.func @transform_1(%arg0: i32) -> (i32, i32) {
    %c0_i32 = arith.constant 0 : i32
    %c0_i32_0 = arith.constant 0 : i32
    %c0_i32_1 = arith.constant 0 : i32
    return %c0_i32, %c0_i32_0 : i32, i32
  }
  func.func @transform_2(%arg0: i32) -> (i32, i32) {
    %c0_i32 = arith.constant 0 : i32
    %c0_i32_0 = arith.constant 0 : i32
    %c0_i32_1 = arith.constant 0 : i32
    return %c0_i32, %c0_i32_0 : i32, i32
  }
  func.func @transform_3(%arg0: i32) -> (i32, i32) {
    %c0_i32 = arith.constant 0 : i32
    %c0_i32_0 = arith.constant 0 : i32
    %c0_i32_1 = arith.constant 0 : i32
    return %c0_i32, %c0_i32_0 : i32, i32
  }
  func.func @transform_4(%arg0: i32) -> (i32, i32) {
    %c0_i32 = arith.constant 0 : i32
    %c0_i32_0 = arith.constant 0 : i32
    return %arg0, %c0_i32 : i32, i32
  }
}

</mosaic_0001>

<bundles_post_ra>
// kernel: tpu_custom_call.1
= control target key start
LH: loop header
LB: loop body
LE: loop exit
PB: predicated region body
PF: predicated region fallthrough
CT: control target
= control target key end

     0   :  { %s932_s15 = smov 0   ;;  %s1161_s0 = inlined_call_operand.vmem [shape: f32[208,16], index: 0, kind: input, shape index: {}]   ;;  %s1162_s1 = inlined_call_operand.vmem [shape: f32[17,64], index: 1, kind: input, shape index: {}]   ;;  %s1163_s2 = inlined_call_operand.vmem [shape: f32[65,32], index: 2, kind: input, shape index: {}]   ;;  %s1164_s3 = inlined_call_operand.vmem [shape: f32[33,128], index: 3, kind: input, shape index: {}]   ;;  %s1165_s4 = inlined_call_operand.vmem [shape: f32[208,8], index: 4, kind: output, shape index: {}]  }
   0x1 LB: > { %s774_s16 = sadd.s32 4294967295, %s905_s15   ;;  %p778_p0 = scmp.ge.s32.totalorder %s905_s15, 1  ;;  %s905_s15 = sphi %s932_s15, %s14_s15  }
   0x2   : > { %p163_p1 = scmp.lt.s32.totalorder %s905_s15, 3 }
   0x4   : > { %p164_p2 = pnand %p778_p0, %p163_p1 }
   0x5   : > { %s189_s21 = smul.u32 (!%p164_p2), 13, %s774_s16 }
   0x6   : > { %167 = sbr.rel (%p164_p2) target bundleno = 770 (0x302), region = 36 }
   0x7   : > { %p190_p3 = scmp.lt.s32.totalorder (!%p164_p2), %s189_s21, 25 }
   0xb   : > { %v215_v0 = vld [vmem:[%s1162_s1 + $0x8] sm:$0xff]  ;;  %v214_v1 = vld [vmem:[%s1162_s1] sm:$0xff]  ;;  %s1167_s21 = smov (!%p190_p3, %s189_s21), 25  ;;  %vm218_vm0 = vcmask 130048   ;;  %v334_v10 = vld [vmem:[%s1163_s2 + $0x38] sm:$0xff]  ;;  %vm337_vm1 = vcmask 523264  }
   0xc   : > { %272 = vmatpush.msra.mxu0 %v215_v0  ;;  %822 = vmatpush.msra.mxu3 %v215_v0  ;;  %s779_s22 = sshll.u32 %s1167_s21, 3  ;;  %v333_v11 = vld [vmem:[%s1163_s2 + $0x30] sm:$0xff]  ;;  %v332_v12 = vld [vmem:[%s1163_s2 + $0x28] sm:$0xff]  ;;  %v331_v13 = vld [vmem:[%s1163_s2 + $0x20] sm:$0xff]  ;;  %vm452_vm2 = vcmask 261120   ;;  %vm704_vm3 = vcmask 64512  }
   0xd   : > { %s954_s25 = scalar_lea.vmem %s1161_s0, %s779_s22  ;;  %385 = vmatpush.msra.mxu1 %v334_v10  ;;  %v330_v16 = vld [vmem:[%s1163_s2 + $0x18] sm:$0xff]  ;;  %v329_v20 = vld [vmem:[%s1163_s2 + $0x10] sm:$0xff]  ;;  %v328_v21 = vld [vmem:[%s1163_s2 + $0x8] sm:$0xff]  ;;  %s1117_s9 = scalar_lea.vmem %s1165_s4, %s779_s22 }
   0xe   : > { %273 = vmatpush.msra.mxu0 %v214_v1  ;;  %823 = vmatpush.msra.mxu3 %v214_v1  ;;  %v201_v2 = vld [vmem:[%s954_s25] sm:$0xff]  ;;  %v202_v3 = vld [vmem:[%s954_s25 + $0x8] sm:$0xff]  ;;  %v203_v4 = vld [vmem:[%s954_s25 + $0x10] sm:$0xff] }
   0xf   : > { %781 = vmatmul.msk.f32.vlgmr.msra.gmra.mxu0 %vm218_vm0, %v201_v2  ;;  %v204_v5 = vld [vmem:[%s954_s25 + $0x18] sm:$0xff]  ;;  %v205_v6 = vld [vmem:[%s954_s25 + $0x20] sm:$0xff]  ;;  %v206_v7 = vld [vmem:[%s954_s25 + $0x28] sm:$0xff]  ;;  %386 = vmatpush.msra.mxu1 %v333_v11 }
  0x10   : > { %v207_v8 = vld [vmem:[%s954_s25 + $0x30] sm:$0xff]  ;;  %v212_v9 = vld [vmem:[%s954_s25 + $0x58] sm:$0xff]  ;;  %824 = vmatpush.msrb.mxu3 %v334_v10  ;;  %v213_v15 = vld [vmem:[%s954_s25 + $0x60] sm:$0xff] }
  0x11   : > { %792 = vmatmul.msk.f32.vlgmr.msra.gmra.mxu3 %vm218_vm0, %v212_v9  ;;  %v208_v14 = vld [vmem:[%s954_s25 + $0x38] sm:$0xff]  ;;  %387 = vmatpush.msra.mxu1 %v332_v12  ;;  %v209_v17 = vld [vmem:[%s954_s25 + $0x40] sm:$0xff]  ;;  %v210_v18 = vld [vmem:[%s954_s25 + $0x48] sm:$0xff] }
  0x12   : > { %825 = vmatpush.msrb.mxu3 %v333_v11  ;;  %v211_v19 = vld [vmem:[%s954_s25 + $0x50] sm:$0xff]  ;;  %v327_v22 = vld [vmem:[%s1163_s2] sm:$0xff]  ;;  %v449_v51 = vld [vmem:[%s1164_s3 + $0x18] sm:$0xff] }
  0x13   : > { %388 = vmatpush.msra.mxu1 %v331_v13  ;;  %v844_v23 = vld [vmem:[%s1162_s1 + $0x10] ss:$0 sm:$0xff]  ;;  %504 = vmatpush.msra.mxu2 %v449_v51  ;;  %v447_v1 = vld [vmem:[%s1164_s3 + $0x8] sm:$0xff]  ;;  %v446_v2 = vld [vmem:[%s1164_s3] sm:$0xff] }
  0x14   : > { %826 = vmatpush.msrb.mxu3 %v332_v12  ;;  %v448_v0 = vld [vmem:[%s1164_s3 + $0x10] sm:$0xff] }
  0x15   : > { %389 = vmatpush.msra.mxu1 %v330_v16  ;;  %505 = vmatpush.msra.mxu2 %v448_v0 }
  0x16   : > { %827 = vmatpush.msrb.mxu3 %v331_v13 }
  0x17   : > { %782 = vmatmul.msk.f32.gmra.mxu0 %vm218_vm0, %v202_v3  ;;  %390 = vmatpush.msra.mxu1 %v329_v20  ;;  %v845_v3 = vld [vmem:[%s1163_s2 + $0x40] ss:$0 sm:$0xff] }
  0x18   : > { %828 = vmatpush.msrb.mxu3 %v330_v16  ;;  %506 = vmatpush.msra.mxu2 %v447_v1 }
  0x19   : > { %793 = vmatmul.msk.f32.gmra.mxu3 %vm218_vm0, %v213_v15  ;;  %391 = vmatpush.msra.mxu1 %v328_v21 }
  0x1a   : > { %829 = vmatpush.msrb.mxu3 %v329_v20  ;;  %507 = vmatpush.msra.mxu2 %v446_v2 }
  0x1b   : > { %392 = vmatpush.msra.mxu1 %v327_v22 }
  0x1c   : > { %830 = vmatpush.msrb.mxu3 %v328_v21 }
  0x1e   : > { %831 = vmatpush.msrb.mxu3 %v327_v22 }
  0x1f   : > { %783 = vmatmul.msk.f32.gmra.mxu0 %vm218_vm0, %v203_v4 }
  0x20   : > { %832 = vmatpush.msra.mxu3 %v449_v51 }
  0x22   : > { %833 = vmatpush.msra.mxu3 %v448_v0 }
  0x24   : > { %834 = vmatpush.msra.mxu3 %v447_v1 }
  0x26   : > { %835 = vmatpush.msra.mxu3 %v446_v2 }
  0x27   : > { %784 = vmatmul.msk.f32.gmra.mxu0 %vm218_vm0, %v204_v5 }
  0x2f   : > { %785 = vmatmul.msk.f32.gmra.mxu0 %vm218_vm0, %v205_v6 }
  0x37   : > { %786 = vmatmul.msk.f32.gmra.mxu0 %vm218_vm0, %v206_v7 }
  0x3f   : > { %787 = vmatmul.msk.f32.gmra.mxu0 %vm218_vm0, %v207_v8 }
  0x47   : > { %788 = vmatmul.msk.f32.gmra.mxu0 %vm218_vm0, %v208_v14 }
  0x4f   : > { %789 = vmatmul.msk.f32.gmra.mxu0 %vm218_vm0, %v209_v17 }
  0x57   : > { %790 = vmatmul.msk.f32.gmra.mxu0 %vm218_vm0, %v210_v18 }
  0x5f   : > { %791 = vmatmul.msk.f32.gmra.mxu0 %vm218_vm0, %v211_v19 }
  0x8c   : > { %v275_v24 = vpop.f32.mrf.mxu0 }
  0x8d   : > { %v276_v25 = vadd.f32 %v844_v23, %v275_v24 }
  0x8f   : > { %v314_v26 = vmax.f32 %v276_v25, 0.0 }
  0x91   : > { %794 = vmatmul.msk.f32.vlgmr.msra.gmra.mxu1 %vm337_vm1, %v314_v26 }
  0x94   : > { %v278_v27 = vpop.f32.mrf.mxu0  ;;  %v308_v56 = vpop.f32.mrf.mxu3 }
  0x95   : > { %v279_v28 = vadd.f32 %v844_v23, %v278_v27  ;;  %v309_v59 = vadd.f32 %v844_v23, %v308_v56 }
  0x97   : > { %v315_v29 = vmax.f32 %v279_v28, 0.0  ;;  %v325_v60 = vmax.f32 %v309_v59, 0.0 }
  0x99   : > { %795 = vmatmul.msk.f32.gmra.mxu1 %vm337_vm1, %v315_v29 }
  0x9c   : > { %v281_v30 = vpop.f32.mrf.mxu0  ;;  %v311_v61 = vpop.f32.mrf.mxu3 }
  0x9d   : > { %v282_v31 = vadd.f32 %v844_v23, %v281_v30  ;;  %v312_v62 = vadd.f32 %v844_v23, %v311_v61 }
  0x9f   : > { %v316_v32 = vmax.f32 %v282_v31, 0.0  ;;  %v326_v63 = vmax.f32 %v312_v62, 0.0 }
  0xa1   : > { %796 = vmatmul.msk.f32.gmra.mxu1 %vm337_vm1, %v316_v32 }
  0xa4   : > { %v284_v33 = vpop.f32.mrf.mxu0 }
  0xa5   : > { %v285_v34 = vadd.f32 %v844_v23, %v284_v33 }
  0xa7   : > { %v317_v35 = vmax.f32 %v285_v34, 0.0 }
  0xa9   : > { %797 = vmatmul.msk.f32.gmra.mxu1 %vm337_vm1, %v317_v35 }
  0xac   : > { %v287_v36 = vpop.f32.mrf.mxu0 }
  0xad   : > { %v288_v37 = vadd.f32 %v844_v23, %v287_v36 }
  0xaf   : > { %v318_v38 = vmax.f32 %v288_v37, 0.0 }
  0xb1   : > { %798 = vmatmul.msk.f32.gmra.mxu1 %vm337_vm1, %v318_v38 }
  0xb4   : > { %v290_v39 = vpop.f32.mrf.mxu0 }
  0xb5   : > { %v291_v40 = vadd.f32 %v844_v23, %v290_v39 }
  0xb7   : > { %v319_v41 = vmax.f32 %v291_v40, 0.0 }
  0xb9   : > { %799 = vmatmul.msk.f32.gmra.mxu1 %vm337_vm1, %v319_v41 }
  0xbc   : > { %v293_v42 = vpop.f32.mrf.mxu0 }
  0xbd   : > { %v294_v43 = vadd.f32 %v844_v23, %v293_v42 }
  0xbf   : > { %v320_v44 = vmax.f32 %v294_v43, 0.0  ;;  %v846_v43 = vld [vmem:[%s1164_s3 + $0x20] ss:$0 sm:$0xff] }
  0xc1   : > { %800 = vmatmul.msk.f32.gmra.mxu1 %vm337_vm1, %v320_v44 }
  0xc4   : > { %v296_v45 = vpop.f32.mrf.mxu0 }
  0xc5   : > { %v297_v46 = vadd.f32 %v844_v23, %v296_v45 }
  0xc7   : > { %v321_v47 = vmax.f32 %v297_v46, 0.0 }
  0xc9   : > { %801 = vmatmul.msk.f32.gmra.mxu1 %vm337_vm1, %v321_v47 }
  0xcc   : > { %v299_v48 = vpop.f32.mrf.mxu0 }
  0xcd   : > { %v300_v49 = vadd.f32 %v844_v23, %v299_v48 }
  0xcf   : > { %v322_v50 = vmax.f32 %v300_v49, 0.0 }
  0xd1   : > { %802 = vmatmul.msk.f32.gmra.mxu1 %vm337_vm1, %v322_v50 }
  0xd4   : > { %v302_v52 = vpop.f32.mrf.mxu0 }
  0xd5   : > { %v303_v53 = vadd.f32 %v844_v23, %v302_v52 }
  0xd7   : > { %v323_v54 = vmax.f32 %v303_v53, 0.0 }
  0xd9   : > { %803 = vmatmul.msk.f32.vlgmr.msrb.gmra.mxu3 %vm337_vm1, %v323_v54 }
  0xdc   : > { %v305_v55 = vpop.f32.mrf.mxu0 }
  0xdd   : > { %v306_v57 = vadd.f32 %v844_v23, %v305_v55 }
  0xdf   : > { %v324_v58 = vmax.f32 %v306_v57, 0.0 }
  0xe1   : > { %804 = vmatmul.msk.f32.gmra.mxu3 %vm337_vm1, %v324_v58 }
  0xe9   : > { %805 = vmatmul.msk.f32.gmra.mxu3 %vm337_vm1, %v325_v60 }
  0xf1   : > { %806 = vmatmul.msk.f32.gmra.mxu3 %vm337_vm1, %v326_v63 }
 0x10e   : > { %v394_v4 = vpop.f32.mrf.mxu1 }
 0x10f   : > { %v395_v5 = vadd.f32 %v845_v3, %v394_v4 }
 0x111   : > { %v433_v6 = vmax.f32 %v395_v5, 0.0 }
 0x113   : > { %807 = vmatmul.msk.f32.vlgmr.msra.gmra.mxu2 %vm452_vm2, %v433_v6 }
 0x116   : > { %v397_v7 = vpop.f32.mrf.mxu1 }
 0x117   : > { %v398_v8 = vadd.f32 %v845_v3, %v397_v7 }
 0x119   : > { %v434_v9 = vmax.f32 %v398_v8, 0.0 }
 0x11b   : > { %808 = vmatmul.msk.f32.gmra.mxu2 %vm452_vm2, %v434_v9 }
 0x11e   : > { %v400_v10 = vpop.f32.mrf.mxu1 }
 0x11f   : > { %v401_v11 = vadd.f32 %v845_v3, %v400_v10 }
 0x121   : > { %v435_v12 = vmax.f32 %v401_v11, 0.0 }
 0x123   : > { %809 = vmatmul.msk.f32.gmra.mxu2 %vm452_vm2, %v435_v12 }
 0x126   : > { %v403_v13 = vpop.f32.mrf.mxu1 }
 0x127   : > { %v404_v14 = vadd.f32 %v845_v3, %v403_v13 }
 0x129   : > { %v436_v15 = vmax.f32 %v404_v14, 0.0 }
 0x12b   : > { %810 = vmatmul.msk.f32.gmra.mxu2 %vm452_vm2, %v436_v15 }
 0x12e   : > { %v406_v16 = vpop.f32.mrf.mxu1 }
 0x12f   : > { %v407_v17 = vadd.f32 %v845_v3, %v406_v16 }
 0x131   : > { %v437_v18 = vmax.f32 %v407_v17, 0.0 }
 0x133   : > { %811 = vmatmul.msk.f32.gmra.mxu2 %vm452_vm2, %v437_v18 }
 0x136   : > { %v409_v19 = vpop.f32.mrf.mxu1 }
 0x137   : > { %v410_v20 = vadd.f32 %v845_v3, %v409_v19 }
 0x139   : > { %v438_v21 = vmax.f32 %v410_v20, 0.0 }
 0x13b   : > { %812 = vmatmul.msk.f32.gmra.mxu2 %vm452_vm2, %v438_v21 }
 0x13e   : > { %v412_v22 = vpop.f32.mrf.mxu1 }
 0x13f   : > { %v413_v23 = vadd.f32 %v845_v3, %v412_v22 }
 0x141   : > { %v439_v24 = vmax.f32 %v413_v23, 0.0 }
 0x143   : > { %813 = vmatmul.msk.f32.gmra.mxu2 %vm452_vm2, %v439_v24 }
 0x146   : > { %v415_v25 = vpop.f32.mrf.mxu1 }
 0x147   : > { %v416_v26 = vadd.f32 %v845_v3, %v415_v25 }
 0x149   : > { %v440_v27 = vmax.f32 %v416_v26, 0.0 }
 0x14b   : > { %814 = vmatmul.msk.f32.gmra.mxu2 %vm452_vm2, %v440_v27 }
 0x14e   : > { %v418_v28 = vpop.f32.mrf.mxu1 }
 0x14f   : > { %v419_v29 = vadd.f32 %v845_v3, %v418_v28 }
 0x151   : > { %v441_v30 = vmax.f32 %v419_v29, 0.0 }
 0x153   : > { %815 = vmatmul.msk.f32.gmra.mxu2 %vm452_vm2, %v441_v30 }
 0x15c   : > { %v421_v31 = vpop.f32.mrf.mxu3 }
 0x15d   : > { %v422_v32 = vadd.f32 %v845_v3, %v421_v31 }
 0x15f   : > { %v442_v33 = vmax.f32 %v422_v32, 0.0 }
 0x161   : > { %816 = vmatmul.msk.f32.gmra.mxu2 %vm452_vm2, %v442_v33 }
 0x164   : > { %v424_v34 = vpop.f32.mrf.mxu3 }
 0x165   : > { %v425_v35 = vadd.f32 %v845_v3, %v424_v34 }
 0x167   : > { %v443_v36 = vmax.f32 %v425_v35, 0.0 }
 0x169   : > { %817 = vmatmul.msk.f32.vlgmr.msra.gmra.mxu3 %vm452_vm2, %v443_v36 }
 0x16c   : > { %v427_v37 = vpop.f32.mrf.mxu3 }
 0x16d   : > { %v428_v38 = vadd.f32 %v845_v3, %v427_v37 }
 0x16f   : > { %v444_v39 = vmax.f32 %v428_v38, 0.0 }
 0x171   : > { %818 = vmatmul.msk.f32.gmra.mxu3 %vm452_vm2, %v444_v39 }
 0x174   : > { %v430_v40 = vpop.f32.mrf.mxu3 }
 0x175   : > { %v431_v41 = vadd.f32 %v845_v3, %v430_v40 }
 0x177   : > { %v445_v42 = vmax.f32 %v431_v41, 0.0 }
 0x179   : > { %819 = vmatmul.msk.f32.gmra.mxu3 %vm452_vm2, %v445_v42 }
 0x196   : > { %v509_v44 = vpop.f32.mrf.mxu2 }
 0x197   : > { %v510_v45 = vadd.f32 %v846_v43, %v509_v44 }
 0x199   : > { %548 = vmax.xlane.f32.xlu0 %v510_v45 }
 0x19e   : > { %v512_v46 = vpop.f32.mrf.mxu2 }
 0x19f   : > { %v513_v47 = vadd.f32 %v846_v43, %v512_v46 }
 0x1a1   : > { %550 = vmax.xlane.f32.xlu0 %v513_v47 }
 0x1a6   : > { %v515_v48 = vpop.f32.mrf.mxu2 }
 0x1a7   : > { %v516_v49 = vadd.f32 %v846_v43, %v515_v48 }
 0x1a9   : > { %552 = vmax.xlane.f32.xlu1 %v516_v49 }
 0x1ae   : > { %v518_v50 = vpop.f32.mrf.mxu2 }
 0x1af   : > { %v519_v51 = vadd.f32 %v846_v43, %v518_v50 }
 0x1b1   : > { %554 = vmax.xlane.f32.xlu1 %v519_v51 }
 0x1b6   : > { %v521_v52 = vpop.f32.mrf.mxu2 }
 0x1b7   : > { %v522_v53 = vadd.f32 %v846_v43, %v521_v52 }
 0x1b9   : > { %556 = vmax.xlane.f32.xlu2 %v522_v53 }
 0x1be   : > { %v524_v54 = vpop.f32.mrf.mxu2 }
 0x1bf   : > { %v525_v55 = vadd.f32 %v846_v43, %v524_v54 }
 0x1c1   : > { %558 = vmax.xlane.f32.xlu2 %v525_v55 }
 0x1c6   : > { %v527_v56 = vpop.f32.mrf.mxu2 }
 0x1c7   : > { %v528_v57 = vadd.f32 %v846_v43, %v527_v56 }
 0x1c9   : > { %560 = vmax.xlane.f32.xlu0 %v528_v57 }
 0x1ce   : > { %v530_v58 = vpop.f32.mrf.mxu2 }
 0x1cf   : > { %v531_v59 = vadd.f32 %v846_v43, %v530_v58 }
 0x1d1   : > { %562 = vmax.xlane.f32.xlu1 %v531_v59 }
 0x1d6   : > { %v533_v60 = vpop.f32.mrf.mxu2 }
 0x1d7   : > { %v1053_v61 = vadd.f32 %v846_v43, %v533_v60 }
 0x1d9   : > { %564 = vmax.xlane.f32.xlu2 %v1053_v61 }
 0x1e4   : > { %v536_v62 = vpop.f32.mrf.mxu2 }
 0x1e5   : > { %v1056_v63 = vadd.f32 %v846_v43, %v536_v62 }
 0x1e7   : > { %566 = vmax.xlane.f32.xlu0 %v1056_v63 }
 0x1ec   : > { %v539_v0 = vpop.f32.mrf.mxu3 }
 0x1ed   : > { %v1059_v1 = vadd.f32 %v846_v43, %v539_v0 }
 0x1ef   : > { %568 = vmax.xlane.f32.xlu1 %v1059_v1 }
 0x1f4   : > { %v542_v2 = vpop.f32.mrf.mxu3 }
 0x1f5   : > { %v1062_v3 = vadd.f32 %v846_v43, %v542_v2 }
 0x1f7   : > { %570 = vmax.xlane.f32.xlu2 %v1062_v3 }
 0x1fc   : > { %v545_v4 = vpop.f32.mrf.mxu3 }
 0x1fd   : > { %v1065_v5 = vadd.f32 %v846_v43, %v545_v4 }
 0x1ff   : > { %572 = vmax.xlane.f32.xlu0 %v1065_v5 }
 0x20c   : > { %v549_v6 = vpop.xlane.xlu0 %548 }
 0x20d   : > { %v574_v7 = vsub.f32 %v510_v45, %v549_v6 }
 0x20f   : > { %v587_v8 = vmul.f32 1.442695, %v574_v7 }
 0x211   : > { %847 = vpow2.f32 %v587_v8 }
 0x214   : > { %v551_v9 = vpop.xlane.xlu0 %550 }
 0x215   : > { %v575_v10 = vsub.f32 %v513_v47, %v551_v9 }
 0x217   : > { %v1068_v11 = vpop.eup %847  ;;  %v589_v12 = vmul.f32 1.442695, %v575_v10 }
 0x218   : > { %613 = vadd.xlane.f32.xlu1 %v1068_v11 }
 0x219   : > { %849 = vpow2.f32 %v589_v12 }
 0x21c   : > { %v553_v13 = vpop.xlane.xlu1 %552 }
 0x21d   : > { %v576_v14 = vsub.f32 %v516_v49, %v553_v13 }
 0x21f   : > { %v1071_v15 = vpop.eup %849  ;;  %v591_v16 = vmul.f32 1.442695, %v576_v14 }
 0x220   : > { %615 = vadd.xlane.f32.xlu2 %v1071_v15 }
 0x221   : > { %851 = vpow2.f32 %v591_v16 }
 0x224   : > { %v555_v17 = vpop.xlane.xlu1 %554 }
 0x225   : > { %v577_v18 = vsub.f32 %v519_v51, %v555_v17 }
 0x227   : > { %v1074_v19 = vpop.eup %851  ;;  %v593_v20 = vmul.f32 1.442695, %v577_v18 }
 0x228   : > { %617 = vadd.xlane.f32.xlu0 %v1074_v19 }
 0x229   : > { %853 = vpow2.f32 %v593_v20 }
 0x22c   : > { %v557_v21 = vpop.xlane.xlu2 %556 }
 0x22d   : > { %v578_v22 = vsub.f32 %v522_v53, %v557_v21 }
 0x22f   : > { %v1077_v23 = vpop.eup %853  ;;  %v595_v24 = vmul.f32 1.442695, %v578_v22 }
 0x230   : > { %619 = vadd.xlane.f32.xlu1 %v1077_v23 }
 0x231   : > { %855 = vpow2.f32 %v595_v24 }
 0x234   : > { %v559_v25 = vpop.xlane.xlu2 %558 }
 0x235   : > { %v579_v26 = vsub.f32 %v525_v55, %v559_v25 }
 0x237   : > { %v1080_v27 = vpop.eup %855  ;;  %v597_v28 = vmul.f32 1.442695, %v579_v26 }
 0x238   : > { %621 = vadd.xlane.f32.xlu2 %v1080_v27 }
 0x239   : > { %857 = vpow2.f32 %v597_v28 }
 0x23c   : > { %v561_v29 = vpop.xlane.xlu0 %560 }
 0x23d   : > { %v580_v30 = vsub.f32 %v528_v57, %v561_v29 }
 0x23f   : > { %v1083_v31 = vpop.eup %857  ;;  %v599_v32 = vmul.f32 1.442695, %v580_v30 }
 0x240   : > { %623 = vadd.xlane.f32.xlu0 %v1083_v31 }
 0x241   : > { %859 = vpow2.f32 %v599_v32 }
 0x244   : > { %v563_v33 = vpop.xlane.xlu1 %562 }
 0x245   : > { %v581_v34 = vsub.f32 %v531_v59, %v563_v33 }
 0x247   : > { %v1086_v35 = vpop.eup %859  ;;  %v601_v36 = vmul.f32 1.442695, %v581_v34 }
 0x248   : > { %625 = vadd.xlane.f32.xlu1 %v1086_v35 }
 0x249   : > { %861 = vpow2.f32 %v601_v36 }
 0x24c   : > { %v565_v37 = vpop.xlane.xlu2 %564 }
 0x24d   : > { %v582_v38 = vsub.f32 %v1053_v61, %v565_v37 }
 0x24f   : > { %v1090_v39 = vpop.eup %861  ;;  %v603_v40 = vmul.f32 1.442695, %v582_v38 }
 0x250   : > { %627 = vadd.xlane.f32.xlu2 %v1090_v39 }
 0x251   : > { %863 = vpow2.f32 %v603_v40 }
 0x257   : > { %v1093_v41 = vpop.eup %863 }
 0x258   : > { %629 = vadd.xlane.f32.xlu0 %v1093_v41 }
 0x25a   : > { %v567_v42 = vpop.xlane.xlu0 %566 }
 0x25b   : > { %v583_v43 = vsub.f32 %v1056_v63, %v567_v42 }
 0x25d   : > { %v605_v44 = vmul.f32 1.442695, %v583_v43 }
 0x25f   : > { %865 = vpow2.f32 %v605_v44 }
 0x262   : > { %v569_v45 = vpop.xlane.xlu1 %568 }
 0x263   : > { %v584_v46 = vsub.f32 %v1059_v1, %v569_v45 }
 0x265   : > { %v1098_v47 = vpop.eup %865  ;;  %v607_v48 = vmul.f32 1.442695, %v584_v46 }
 0x266   : > { %631 = vadd.xlane.f32.xlu1 %v1098_v47 }
 0x267   : > { %867 = vpow2.f32 %v607_v48 }
 0x26a   : > { %v571_v49 = vpop.xlane.xlu2 %570 }
 0x26b   : > { %v585_v50 = vsub.f32 %v1062_v3, %v571_v49 }
 0x26d   : > { %v1102_v51 = vpop.eup %867  ;;  %v609_v52 = vmul.f32 1.442695, %v585_v50 }
 0x26e   : > { %633 = vadd.xlane.f32.xlu2 %v1102_v51 }
 0x26f   : > { %869 = vpow2.f32 %v609_v52 }
 0x272   : > { %v573_v53 = vpop.xlane.xlu0 %572 }
 0x273   : > { %v586_v54 = vsub.f32 %v1065_v5, %v573_v53 }
 0x275   : > { %v1106_v55 = vpop.eup %869  ;;  %v611_v56 = vmul.f32 1.442695, %v586_v54 }
 0x276   : > { %635 = vadd.xlane.f32.xlu0 %v1106_v55 }
 0x277   : > { %871 = vpow2.f32 %v611_v56 }
 0x27d   : > { %v1109_v57 = vpop.eup %871 }
 0x27e   : > { %637 = vadd.xlane.f32.xlu1 %v1109_v57 }
 0x28b   : > { %v614_v58 = vpop.xlane.xlu1 %613 }
 0x28c   : > { %873 = vrcp.f32 %v614_v58 }
 0x292   : > { %v874_v59 = vpop.eup %873 }
 0x293   : > { %v652_v60 = vmul.f32 %v874_v59, %v614_v58  ;;  %v616_v61 = vpop.xlane.xlu2 %615 }
 0x294   : > { %875 = vrcp.f32 %v616_v61 }
 0x295   : > { %v665_v62 = vsub.f32 2.0, %v652_v60 }
 0x297   : > { %v678_v63 = vmul.f32 %v874_v59, %v665_v62 }
 0x299   : > { %v691_v0 = vmul.f32 %v1068_v11, %v678_v63 }
 0x29a   : > { %v876_v1 = vpop.eup %875 }
 0x29b   : > { %705 = vst.msk [vmem:[%s1117_s9] sm:$0xff] %vm704_vm3, %v691_v0  ;;  %v653_v2 = vmul.f32 %v876_v1, %v616_v61  ;;  %v618_v3 = vpop.xlane.xlu0 %617 }
 0x29c   : > { %877 = vrcp.f32 %v618_v3 }
 0x29d   : > { %v666_v4 = vsub.f32 2.0, %v653_v2 }
 0x29f   : > { %v679_v5 = vmul.f32 %v876_v1, %v666_v4 }
 0x2a1   : > { %v692_v6 = vmul.f32 %v1071_v15, %v679_v5 }
 0x2a2   : > { %v878_v7 = vpop.eup %877 }
 0x2a3   : > { %706 = vst.msk [vmem:[%s1117_s9 + $0x8] sm:$0xff] %vm704_vm3, %v692_v6  ;;  %v654_v8 = vmul.f32 %v878_v7, %v618_v3  ;;  %v620_v9 = vpop.xlane.xlu1 %619 }
 0x2a4   : > { %879 = vrcp.f32 %v620_v9 }
 0x2a5   : > { %v667_v10 = vsub.f32 2.0, %v654_v8 }
 0x2a7   : > { %v680_v11 = vmul.f32 %v878_v7, %v667_v10 }
 0x2a9   : > { %v693_v12 = vmul.f32 %v1074_v19, %v680_v11 }
 0x2aa   : > { %v880_v13 = vpop.eup %879 }
 0x2ab   : > { %707 = vst.msk [vmem:[%s1117_s9 + $0x10] sm:$0xff] %vm704_vm3, %v693_v12  ;;  %v655_v14 = vmul.f32 %v880_v13, %v620_v9  ;;  %v622_v16 = vpop.xlane.xlu2 %621 }
 0x2ac   : > { %881 = vrcp.f32 %v622_v16 }
 0x2ad   : > { %v668_v17 = vsub.f32 2.0, %v655_v14 }
 0x2af   : > { %v681_v15 = vmul.f32 %v880_v13, %v668_v17 }
 0x2b1   : > { %v694_v18 = vmul.f32 %v1077_v23, %v681_v15 }
 0x2b2   : > { %v882_v20 = vpop.eup %881 }
 0x2b3   : > { %708 = vst.msk [vmem:[%s1117_s9 + $0x18] sm:$0xff] %vm704_vm3, %v694_v18  ;;  %v656_v21 = vmul.f32 %v882_v20, %v622_v16  ;;  %v624_v22 = vpop.xlane.xlu0 %623 }
 0x2b4   : > { %883 = vrcp.f32 %v624_v22 }
 0x2b5   : > { %v669_v24 = vsub.f32 2.0, %v656_v21 }
 0x2b7   : > { %v682_v19 = vmul.f32 %v882_v20, %v669_v24 }
 0x2b9   : > { %v695_v25 = vmul.f32 %v1080_v27, %v682_v19 }
 0x2ba   : > { %v884_v26 = vpop.eup %883 }
 0x2bb   : > { %709 = vst.msk [vmem:[%s1117_s9 + $0x20] sm:$0xff] %vm704_vm3, %v695_v25  ;;  %v657_v28 = vmul.f32 %v884_v26, %v624_v22  ;;  %v626_v29 = vpop.xlane.xlu1 %625 }
 0x2bc   : > { %885 = vrcp.f32 %v626_v29 }
 0x2bd   : > { %v670_v30 = vsub.f32 2.0, %v657_v28 }
 0x2bf   : > { %v683_v23 = vmul.f32 %v884_v26, %v670_v30 }
 0x2c1   : > { %v696_v32 = vmul.f32 %v1083_v31, %v683_v23 }
 0x2c2   : > { %v886_v33 = vpop.eup %885 }
 0x2c3   : > { %710 = vst.msk [vmem:[%s1117_s9 + $0x28] sm:$0xff] %vm704_vm3, %v696_v32  ;;  %v658_v34 = vmul.f32 %v886_v33, %v626_v29  ;;  %v628_v36 = vpop.xlane.xlu2 %627 }
 0x2c4   : > { %887 = vrcp.f32 %v628_v36 }
 0x2c5   : > { %v671_v37 = vsub.f32 2.0, %v658_v34 }
 0x2c7   : > { %v684_v27 = vmul.f32 %v886_v33, %v671_v37 }
 0x2c9   : > { %v697_v38 = vmul.f32 %v1086_v35, %v684_v27 }
 0x2ca   : > { %v888_v40 = vpop.eup %887 }
 0x2cb   : > { %711 = vst.msk [vmem:[%s1117_s9 + $0x30] sm:$0xff] %vm704_vm3, %v697_v38  ;;  %v659_v42 = vmul.f32 %v888_v40, %v628_v36  ;;  %v630_v43 = vpop.xlane.xlu0 %629 }
 0x2cc   : > { %889 = vrcp.f32 %v630_v43 }
 0x2cd   : > { %v672_v44 = vsub.f32 2.0, %v659_v42 }
 0x2cf   : > { %v685_v31 = vmul.f32 %v888_v40, %v672_v44 }
 0x2d1   : > { %v698_v45 = vmul.f32 %v1090_v39, %v685_v31 }
 0x2d2   : > { %v890_v46 = vpop.eup %889 }
 0x2d3   : > { %712 = vst.msk [vmem:[%s1117_s9 + $0x38] sm:$0xff] %vm704_vm3, %v698_v45  ;;  %v660_v48 = vmul.f32 %v890_v46, %v630_v43 }
 0x2d5   : > { %v673_v49 = vsub.f32 2.0, %v660_v48 }
 0x2d7   : > { %v686_v50 = vmul.f32 %v890_v46, %v673_v49 }
 0x2d9   : > { %v699_v35 = vmul.f32 %v1093_v41, %v686_v50  ;;  %v632_v52 = vpop.xlane.xlu1 %631 }
 0x2da   : > { %891 = vrcp.f32 %v632_v52 }
 0x2db   : > { %713 = vst.msk [vmem:[%s1117_s9 + $0x40] sm:$0xff] %vm704_vm3, %v699_v35 }
 0x2e0   : > { %v892_v53 = vpop.eup %891 }
 0x2e1   : > { %v661_v54 = vmul.f32 %v892_v53, %v632_v52  ;;  %v634_v56 = vpop.xlane.xlu2 %633 }
 0x2e2   : > { %893 = vrcp.f32 %v634_v56 }
 0x2e3   : > { %v674_v58 = vsub.f32 2.0, %v661_v54 }
 0x2e5   : > { %v687_v39 = vmul.f32 %v892_v53, %v674_v58 }
 0x2e7   : > { %v700_v59 = vmul.f32 %v1098_v47, %v687_v39 }
 0x2e8   : > { %v894_v60 = vpop.eup %893 }
 0x2e9   : > { %714 = vst.msk [vmem:[%s1117_s9 + $0x48] sm:$0xff] %vm704_vm3, %v700_v59  ;;  %v662_v61 = vmul.f32 %v894_v60, %v634_v56  ;;  %v636_v62 = vpop.xlane.xlu0 %635 }
 0x2ea   : > { %895 = vrcp.f32 %v636_v62 }
 0x2eb   : > { %v675_v41 = vsub.f32 2.0, %v662_v61 }
 0x2ed   : > { %v688_v63 = vmul.f32 %v894_v60, %v675_v41 }
 0x2ef   : > { %v701_v0 = vmul.f32 %v1102_v51, %v688_v63 }
 0x2f0   : > { %v896_v1 = vpop.eup %895 }
 0x2f1   : > { %715 = vst.msk [vmem:[%s1117_s9 + $0x50] sm:$0xff] %vm704_vm3, %v701_v0  ;;  %v663_v2 = vmul.f32 %v896_v1, %v636_v62  ;;  %v638_v3 = vpop.xlane.xlu1 %637 }
 0x2f2   : > { %897 = vrcp.f32 %v638_v3 }
 0x2f3   : > { %v676_v4 = vsub.f32 2.0, %v663_v2 }
 0x2f5   : > { %v689_v47 = vmul.f32 %v896_v1, %v676_v4 }
 0x2f7   : > { %v702_v5 = vmul.f32 %v1106_v55, %v689_v47 }
 0x2f8   : > { %v898_v6 = vpop.eup %897 }
 0x2f9   : > { %716 = vst.msk [vmem:[%s1117_s9 + $0x58] sm:$0xff] %vm704_vm3, %v702_v5  ;;  %v664_v7 = vmul.f32 %v898_v6, %v638_v3 }
 0x2fb   : > { %v677_v8 = vsub.f32 2.0, %v664_v7 }
 0x2fd   : > { %v690_v9 = vmul.f32 %v898_v6, %v677_v8 }
 0x2ff   : > { %v703_v10 = vmul.f32 %v1109_v57, %v690_v9 }
 0x301   : > { %717 = vst.msk [vmem:[%s1117_s9 + $0x60] sm:$0xff] %vm704_vm3, %v703_v10 }
 0x302 PF: > { %s14_s15 = sadd.s32 1, %s905_s15  }
 0x303   : > { %p11_p4 = scmp.ge.s32.totalorder %s14_s15, 4  }
 0x305   :  { %13 = sbr.rel (!%p11_p4) target bundleno = 1 (0x1), region = 66 }

</bundles_post_ra>
